<compile_context>
chip_gen: v7x
topology: tpu7x:2x2x1
jax: 0.10.0
libtpu: 0.0.40
codegen_flags: <defaults>
</compile_context>

<pallas_src>
import functools

import jax
import jax.numpy as jnp
from jax import lax
from jax.experimental import pallas as pl
from jax.experimental.pallas import tpu as pltpu

LN_EPS = 1e-5    # nn.LayerNorm default eps
L2_EPS = 1e-12   # F.normalize default eps


def _round_up(a, b):
    return (a + b - 1) // b * b


# ---------------- fused proj (1x1 conv) + LayerNorm + cross-covariance ------

def _fused_proj_ln_cov_kernel(x_ref, pw_ref, pb_ref, lnw_ref, lnb_ref, cov_ref,
                              *, num_heads, d, n_tok, n_pad, d_pad, mxu_dtype):
    """One grid step == one batch element.

    x_ref   : (1, C, N_pad)   pixels for this batch, token columns lane-dense
    pw_ref  : (hidden, C)     proj weight, rows pre-permuted to index h*d + g
    pb_ref  : (hidden, 1)     proj bias (same permutation)
    lnw_ref : (d, 1)          LayerNorm gamma
    lnb_ref : (d, 1)          LayerNorm beta
    cov_ref : (1, Q, d, d_pad) Q = num_heads-1 normalized cross-covariances,
                               lane dim zero-padded to a multiple of 128
    """
    n_pairs = num_heads - 1
    xt = x_ref[0]                                                 # (C, N_pad)

    # ---- 1x1-conv projection: one lane-dense MXU matmul -------------------
    proj = (jnp.dot(pw_ref[...], xt, preferred_element_type=jnp.float32)
            + pb_ref[...])                                        # (hidden, N_pad)

    # ---- per-head LayerNorm over d, vectorized across all heads -----------
    v = proj.reshape(num_heads, d, n_pad)                         # head-contiguous rows
    mu = jnp.mean(v, axis=1, keepdims=True)                       # (nh, 1, N_pad)
    vc = v - mu
    var = jnp.mean(vc * vc, axis=1, keepdims=True)
    gamma = lnw_ref[...][None]                                    # (1, d, 1)
    beta = lnb_ref[...][None]
    y = vc * lax.rsqrt(var + LN_EPS) * gamma + beta               # (nh, d, N_pad)

    # mask padded token columns out of every token reduction
    if n_pad > n_tok:
        col = lax.broadcasted_iota(jnp.int32, (1, 1, n_pad), 2)
        valid = col < n_tok
        y = jnp.where(valid, y, 0.0)

    # ---- Covariance.remove_mean: per-(head, batch) global mean over (d, N) --
    head_sum = jnp.sum(jnp.sum(y, axis=2, keepdims=True), axis=1, keepdims=True)
    z = y - head_sum * (1.0 / (d * n_tok))
    if n_pad > n_tok:
        z = jnp.where(valid, z, 0.0)

    # ---- batched cross-covariance for the (h, h+1) pairs -------------------
    z1 = z[:n_pairs].astype(mxu_dtype)                            # (Q, d, N_pad)
    z2 = z[1:].astype(mxu_dtype)                                  # (Q, d, N_pad)
    cov = jnp.einsum('qin,qjn->qij', z1, z2,
                     preferred_element_type=jnp.float32) * (1.0 / n_tok)

    # ---- F.normalize(dim=2): L2 over the row index i, per (pair, j) --------
    nrm = jnp.sqrt(jnp.sum(cov * cov, axis=1, keepdims=True))     # (Q, 1, d)
    covn = cov / jnp.maximum(nrm, L2_EPS)                         # (Q, d, d)

    # lane-pad to d_pad so the output store is unmasked / lane-dense
    if d_pad > d:
        covn = jnp.concatenate(
            [covn, jnp.zeros((n_pairs, d, d_pad - d), jnp.float32)], axis=-1)
    cov_ref[0] = covn


# ---------------- parameter preparation (hoisted, runs once) -----------------

def prepare_params(params, *, num_heads):
    hidden, in_dim = params['proj_w'].shape
    d = hidden // num_heads
    # PyTorch's reshape(B, d, nh, N).permute(2, 0, 3, 1) gives head h the
    # interleaved channels {g*nh + h}; bake that permutation into the weights
    # so the in-kernel head split is a free, sublane-aligned static view.
    pw = params['proj_w'].reshape(d, num_heads, in_dim).transpose(1, 0, 2)
    pb = params['proj_b'].reshape(d, num_heads).transpose(1, 0)
    out = dict(params)
    out['pw_perm'] = pw.reshape(hidden, in_dim)
    out['pb_perm'] = pb.reshape(hidden, 1)
    out['ln_w_col'] = params['ln_w'].reshape(d, 1)
    out['ln_b_col'] = params['ln_b'].reshape(d, 1)
    out['cls2_wt'] = params['cls2_w'].T
    return out


# ---------------- forward (Pallas path) ---------------------------------------

def moment_probing_forward(x, params, *, num_heads, mxu_dtype=jnp.float32):
    B, C, H, W = x.shape
    N = H * W
    hidden = params['pw_perm'].shape[0]
    d = hidden // num_heads
    n_pairs = num_heads - 1
    N_pad = _round_up(N, 128)
    d_pad = _round_up(d, 128)

    # cls head: global avg-pool + fc -- tiny, left to XLA (no pool-matrix DMA)
    pooled = jnp.mean(x, axis=(2, 3))
    cls_token = pooled @ params['fc_w'].T + params['fc_b']

    # lane-dense per-batch pixel layout, token axis padded to 128 lanes
    xr = x.reshape(B, C, N)
    if N_pad > N:
        xr = jnp.pad(xr, ((0, 0), (0, 0), (0, N_pad - N)))
    # TODO(synk): flip mxu_dtype to jnp.bfloat16 on v6e/v7x once the accuracy
    # budget allows -- operands cast here, accumulation stays f32 in-kernel.
    xr = xr.astype(mxu_dtype)
    pw = params['pw_perm'].astype(mxu_dtype)

    cov_pad = pl.pallas_call(
        functools.partial(_fused_proj_ln_cov_kernel, num_heads=num_heads, d=d,
                          n_tok=N, n_pad=N_pad, d_pad=d_pad, mxu_dtype=mxu_dtype),
        out_shape=jax.ShapeDtypeStruct((B, n_pairs, d, d_pad), jnp.float32),
        grid=(B,),
        in_specs=[pl.BlockSpec((1, C, N_pad), lambda b: (b, 0, 0)),
                  pl.BlockSpec((hidden, C), lambda b: (0, 0)),
                  pl.BlockSpec((hidden, 1), lambda b: (0, 0)),
                  pl.BlockSpec((d, 1), lambda b: (0, 0)),
                  pl.BlockSpec((d, 1), lambda b: (0, 0))],
        out_specs=pl.BlockSpec((1, n_pairs, d, d_pad), lambda b: (b, 0, 0, 0)),
        compiler_params=pltpu.CompilerParams(
            dimension_semantics=("parallel",),
            vmem_limit_bytes=64 * 1024 * 1024),
    )(xr, pw, params['pb_perm'], params['ln_w_col'], params['ln_b_col'])

    cov_list = cov_pad[..., :d]                                   # (B, nh-1, d, d)

    # downblocks: Conv2d(3,3,3,s=2) -> GELU -> Conv2d(3,3,3,s=2); tiny, left
    # to XLA on purpose.
    # TODO(synk): fold the 3x3/s2 downblocks into a Pallas tail kernel via
    # selection-matrix matmuls if this XLA glue ever shows up in profiles.
    dn = ('NCHW', 'OIHW', 'NCHW')
    y = lax.conv_general_dilated(cov_list, params['conv1_w'], (2, 2), 'VALID',
                                 dimension_numbers=dn)
    y = jax.nn.gelu(y, approximate=False)
    y = lax.conv_general_dilated(y, params['conv2_w'], (2, 2), 'VALID',
                                 dimension_numbers=dn)
    cross = y.reshape(B, -1) @ params['cls2_wt'] + params['cls2_b']
    return (cls_token + cross) * 0.5


# ---------------- pure-JAX reference ------------------------------------------

def reference_forward(x, params, *, num_heads):
    B, C, H, W = x.shape
    N = H * W
    hidden = params['proj_w'].shape[0]
    d = hidden // num_heads

    pooled = jnp.mean(x, axis=(2, 3))
    cls_token = pooled @ params['fc_w'].T + params['fc_b']

    xp = jnp.einsum('bchw,oc->bohw', x, params['proj_w']) \
        + params['proj_b'][None, :, None, None]
    xr = xp.reshape(B, hidden, N)
    heads = xr.reshape(B, d, num_heads, N).transpose(2, 0, 3, 1)   # (nh, B, N, d)

    def ln(v):
        mu = v.mean(-1, keepdims=True)
        var = ((v - mu) ** 2).mean(-1, keepdims=True)
        return (v - mu) / jnp.sqrt(var + LN_EPS) * params['ln_w'] + params['ln_b']

    def cov_pair(a, b2):
        a = ln(a)
        b2 = ln(b2)
        a = a - a.mean(axis=(1, 2), keepdims=True)
        b2 = b2 - b2.mean(axis=(1, 2), keepdims=True)
        cv = jnp.einsum('bni,bnj->bij', a, b2) / N
        nrm = jnp.sqrt((cv ** 2).sum(axis=1, keepdims=True))
        return cv / jnp.maximum(nrm, L2_EPS)

    cov_list = jnp.stack([cov_pair(heads[i], heads[i + 1])
                          for i in range(num_heads - 1)], axis=1)
    dn = ('NCHW', 'OIHW', 'NCHW')
    y = lax.conv_general_dilated(cov_list, params['conv1_w'], (2, 2), 'VALID',
                                 dimension_numbers=dn)
    y = jax.nn.gelu(y, approximate=False)
    y = lax.conv_general_dilated(y, params['conv2_w'], (2, 2), 'VALID',
                                 dimension_numbers=dn)
    cross = y.reshape(B, -1) @ params['cls2_w'].T + params['cls2_b']
    return (cls_token + cross) / 2


# ---------------- main ---------------------------------------------------------

if __name__ == "__main__":
    key = jax.random.PRNGKey(0)
    B, in_dim, Hs, Ws = 2, 16, 8, 8
    hidden_dim, num_heads, num_classes = 64, 4, 10
    d = hidden_dim // num_heads            # 16

    ks = jax.random.split(key, 10)
    x = jax.random.normal(ks[0], (B, in_dim, Hs, Ws), jnp.float32)

    # downblock output spatial size -> classifier2 input features
    o1 = (d - 3) // 2 + 1                  # 7
    o2 = (o1 - 3) // 2 + 1                 # 3
    flat_dim = (num_heads - 1) * o2 * o2   # 27

    params = dict(
        proj_w=0.2 * jax.random.normal(ks[1], (hidden_dim, in_dim), jnp.float32),
        proj_b=0.1 * jax.random.normal(ks[2], (hidden_dim,), jnp.float32),
        ln_w=1.0 + 0.1 * jax.random.normal(ks[3], (d,), jnp.float32),
        ln_b=0.1 * jax.random.normal(ks[4], (d,), jnp.float32),
        fc_w=0.1 * jax.random.normal(ks[5], (num_classes, in_dim), jnp.float32),
        fc_b=0.1 * jax.random.normal(ks[6], (num_classes,), jnp.float32),
        conv1_w=0.2 * jax.random.normal(ks[7], (3, 3, 3, 3), jnp.float32),
        conv2_w=0.2 * jax.random.normal(ks[8], (3, 3, 3, 3), jnp.float32),
        cls2_w=0.1 * jax.random.normal(ks[9], (num_classes, flat_dim), jnp.float32),
        cls2_b=jnp.zeros((num_classes,), jnp.float32),
    )

    # weight permutation / transposes hoisted out of the per-call path
    pparams = prepare_params(params, num_heads=num_heads)

    fwd = jax.jit(functools.partial(moment_probing_forward, num_heads=num_heads))
    out = jax.block_until_ready(fwd(x, pparams))

    ref = reference_forward(x, params, num_heads=num_heads)
    assert out.shape == (B, num_classes)
    assert bool(jnp.all(jnp.isfinite(out)))
    # f32 MXU path -> tight tolerance (per review; loosen only if mxu_dtype=bf16)
    assert bool(jnp.allclose(out, ref, rtol=1e-3, atol=1e-3)), (out, ref)
    print("KERNEL_OK")
</pallas_src>

<mosaic_0001>
module attributes {stable_mosaic.version = 11 : i64} {
  func.func @_fused_proj_ln_cov_kernel(%arg0: i32, %arg1: memref<1x16x128xf32, #tpu.memory_space<vmem>>, %arg2: memref<64x16xf32, #tpu.memory_space<vmem>>, %arg3: memref<64x1xf32, #tpu.memory_space<vmem>>, %arg4: memref<16x1xf32, #tpu.memory_space<vmem>>, %arg5: memref<16x1xf32, #tpu.memory_space<vmem>>, %arg6: memref<1x3x16x128xf32, #tpu.memory_space<vmem>>) attributes {dimension_semantics = [#tpu.dimension_semantics<parallel>], iteration_bounds = array<i64: 2>, scalar_prefetch = 0 : i64, scratch_operands = 0 : i64, tpu.core_type = #tpu.core_type<tc>, window_params = [{transform_indices = @transform_0, window_bounds = array<i64: 1, 16, 128>}, {pipeline_mode = #tpu.pipeline_mode<synchronous>, transform_indices = @transform_1, window_bounds = array<i64: 64, 16>}, {pipeline_mode = #tpu.pipeline_mode<synchronous>, transform_indices = @transform_2, window_bounds = array<i64: 64, 1>}, {pipeline_mode = #tpu.pipeline_mode<synchronous>, transform_indices = @transform_3, window_bounds = array<i64: 16, 1>}, {pipeline_mode = #tpu.pipeline_mode<synchronous>, transform_indices = @transform_4, window_bounds = array<i64: 16, 1>}, {transform_indices = @transform_5, window_bounds = array<i64: 1, 3, 16, 128>}]} {
    %c0 = arith.constant 0 : index
    %c0_0 = arith.constant 0 : index
    %c0_1 = arith.constant 0 : index
    %0 = vector.load %arg1[%c0, %c0_0, %c0_1] : memref<1x16x128xf32, #tpu.memory_space<vmem>>, vector<1x16x128xf32>
    %1 = vector.shape_cast %0 : vector<1x16x128xf32> to vector<16x128xf32>
    %c0_2 = arith.constant 0 : index
    %c0_3 = arith.constant 0 : index
    %2 = vector.load %arg2[%c0_2, %c0_3] : memref<64x16xf32, #tpu.memory_space<vmem>>, vector<64x16xf32>
    %cst = arith.constant dense<0.000000e+00> : vector<64x128xf32>
    %3 = tpu.matmul %2, %1, %cst {dimension_numbers = #tpu.dot_dimension_numbers<[1], [0], [0], [1], [0, 0, 1, 1], [], []>} : vector<64x16xf32>, vector<16x128xf32>, vector<64x128xf32> -> vector<64x128xf32>
    %c0_4 = arith.constant 0 : index
    %c0_5 = arith.constant 0 : index
    %4 = vector.load %arg3[%c0_4, %c0_5] : memref<64x1xf32, #tpu.memory_space<vmem>>, vector<64x1xf32>
    %5 = vector.broadcast %4 : vector<64x1xf32> to vector<64x128xf32>
    %6 = arith.addf %3, %5 : vector<64x128xf32>
    %7 = vector.shape_cast %6 : vector<64x128xf32> to vector<4x16x128xf32>
    %cst_6 = arith.constant dense<0.000000e+00> : vector<4x128xf32>
    %8 = vector.multi_reduction <add>, %7, %cst_6 [1] : vector<4x16x128xf32> to vector<4x128xf32>
    %9 = vector.shape_cast %8 : vector<4x128xf32> to vector<4x1x128xf32>
    %cst_7 = arith.constant 1.600000e+01 : f32
    %10 = vector.broadcast %cst_7 : f32 to vector<4x1x128xf32>
    %11 = arith.divf %9, %10 : vector<4x1x128xf32>
    %12 = vector.broadcast %11 : vector<4x1x128xf32> to vector<4x16x128xf32>
    %13 = arith.subf %7, %12 : vector<4x16x128xf32>
    %14 = arith.mulf %13, %13 : vector<4x16x128xf32>
    %cst_8 = arith.constant dense<0.000000e+00> : vector<4x128xf32>
    %15 = vector.multi_reduction <add>, %14, %cst_8 [1] : vector<4x16x128xf32> to vector<4x128xf32>
    %16 = vector.shape_cast %15 : vector<4x128xf32> to vector<4x1x128xf32>
    %cst_9 = arith.constant 1.600000e+01 : f32
    %17 = vector.broadcast %cst_9 : f32 to vector<4x1x128xf32>
    %18 = arith.divf %16, %17 : vector<4x1x128xf32>
    %c0_10 = arith.constant 0 : index
    %c0_11 = arith.constant 0 : index
    %19 = vector.load %arg4[%c0_10, %c0_11] : memref<16x1xf32, #tpu.memory_space<vmem>>, vector<16x1xf32>
    %20 = vector.shape_cast %19 : vector<16x1xf32> to vector<1x16x1xf32>
    %c0_12 = arith.constant 0 : index
    %c0_13 = arith.constant 0 : index
    %21 = vector.load %arg5[%c0_12, %c0_13] : memref<16x1xf32, #tpu.memory_space<vmem>>, vector<16x1xf32>
    %22 = vector.shape_cast %21 : vector<16x1xf32> to vector<1x16x1xf32>
    %cst_14 = arith.constant 9.99999974E-6 : f32
    %23 = vector.broadcast %cst_14 : f32 to vector<4x1x128xf32>
    %24 = arith.addf %18, %23 : vector<4x1x128xf32>
    %25 = math.rsqrt %24 : vector<4x1x128xf32>
    %26 = vector.broadcast %25 : vector<4x1x128xf32> to vector<4x16x128xf32>
    %27 = arith.mulf %13, %26 : vector<4x16x128xf32>
    %28 = vector.broadcast %20 : vector<1x16x1xf32> to vector<4x16x128xf32>
    %29 = arith.mulf %27, %28 : vector<4x16x128xf32>
    %30 = vector.broadcast %22 : vector<1x16x1xf32> to vector<4x16x128xf32>
    %31 = arith.addf %29, %30 : vector<4x16x128xf32>
    %32 = tpu.iota {dimensions = array<i32: 2>} : vector<1x1x128xi32>
    %c64_i32 = arith.constant 64 : i32
    %33 = vector.broadcast %c64_i32 : i32 to vector<1x1x128xi32>
    %34 = arith.cmpi slt, %32, %33 : vector<1x1x128xi32>
    %cst_15 = arith.constant 0.000000e+00 : f32
    %35 = vector.shape_cast %34 : vector<1x1x128xi1> to vector<1x1x128xi1>
    %36 = vector.broadcast %35 : vector<1x1x128xi1> to vector<4x16x128xi1>
    %37 = vector.broadcast %cst_15 : f32 to vector<4x16x128xf32>
    %38 = arith.select %36, %31, %37 : vector<4x16x128xi1>, vector<4x16x128xf32>
    %cst_16 = arith.constant dense<0.000000e+00> : vector<4x16xf32>
    %39 = vector.multi_reduction <add>, %38, %cst_16 [2] : vector<4x16x128xf32> to vector<4x16xf32>
    %40 = vector.shape_cast %39 : vector<4x16xf32> to vector<4x16x1xf32>
    %cst_17 = arith.constant dense<0.000000e+00> : vector<4x1xf32>
    %41 = vector.multi_reduction <add>, %40, %cst_17 [1] : vector<4x16x1xf32> to vector<4x1xf32>
    %42 = vector.shape_cast %41 : vector<4x1xf32> to vector<4x1x1xf32>
    %cst_18 = arith.constant 9.765625E-4 : f32
    %43 = vector.broadcast %cst_18 : f32 to vector<4x1x1xf32>
    %44 = arith.mulf %42, %43 : vector<4x1x1xf32>
    %45 = vector.broadcast %44 : vector<4x1x1xf32> to vector<4x16x128xf32>
    %46 = arith.subf %38, %45 : vector<4x16x128xf32>
    %cst_19 = arith.constant 0.000000e+00 : f32
    %47 = vector.shape_cast %34 : vector<1x1x128xi1> to vector<1x1x128xi1>
    %48 = vector.broadcast %47 : vector<1x1x128xi1> to vector<4x16x128xi1>
    %49 = vector.broadcast %cst_19 : f32 to vector<4x16x128xf32>
    %50 = arith.select %48, %46, %49 : vector<4x16x128xi1>, vector<4x16x128xf32>
    %51 = vector.extract_strided_slice %50 {offsets = [0, 0, 0], sizes = [3, 16, 128], strides = [1, 1, 1]} : vector<4x16x128xf32> to vector<3x16x128xf32>
    %52 = vector.extract_strided_slice %50 {offsets = [1, 0, 0], sizes = [3, 16, 128], strides = [1, 1, 1]} : vector<4x16x128xf32> to vector<3x16x128xf32>
    "tpu.trace_start"() <{level = 10 : i32, message = "qin,qjn->qij"}> : () -> ()
    %cst_20 = arith.constant dense<0.000000e+00> : vector<3x16x16xf32>
    %53 = tpu.matmul %51, %52, %cst_20 {dimension_numbers = #tpu.dot_dimension_numbers<[2], [2], [1], [1], [0, 0, 0, 1, 1, 1], [0], [0]>} : vector<3x16x128xf32>, vector<3x16x128xf32>, vector<3x16x16xf32> -> vector<3x16x16xf32>
    "tpu.trace_stop"() : () -> ()
    %cst_21 = arith.constant 1.562500e-02 : f32
    %54 = vector.broadcast %cst_21 : f32 to vector<3x16x16xf32>
    %55 = arith.mulf %53, %54 : vector<3x16x16xf32>
    %56 = arith.mulf %55, %55 : vector<3x16x16xf32>
    %cst_22 = arith.constant dense<0.000000e+00> : vector<3x16xf32>
    %57 = vector.multi_reduction <add>, %56, %cst_22 [1] : vector<3x16x16xf32> to vector<3x16xf32>
    %58 = vector.shape_cast %57 : vector<3x16xf32> to vector<3x1x16xf32>
    %59 = math.sqrt %58 : vector<3x1x16xf32>
    %cst_23 = arith.constant 9.99999996E-13 : f32
    %60 = vector.broadcast %cst_23 : f32 to vector<3x1x16xf32>
    %61 = arith.maximumf %59, %60 : vector<3x1x16xf32>
    %62 = vector.broadcast %61 : vector<3x1x16xf32> to vector<3x16x16xf32>
    %63 = arith.divf %55, %62 : vector<3x16x16xf32>
    %cst_24 = arith.constant 0.000000e+00 : f32
    %64 = vector.broadcast %cst_24 : f32 to vector<3x16x112xf32>
    %65 = tpu.concatenate %63, %64 in 2 : vector<3x16x16xf32>, vector<3x16x112xf32> -> vector<3x16x128xf32>
    %c0_25 = arith.constant 0 : index
    %c0_26 = arith.constant 0 : index
    %c0_27 = arith.constant 0 : index
    %c0_28 = arith.constant 0 : index
    %66 = vector.load %arg6[%c0_25, %c0_26, %c0_27, %c0_28] : memref<1x3x16x128xf32, #tpu.memory_space<vmem>>, vector<1x3x16x128xf32>
    %67 = vector.shape_cast %66 : vector<1x3x16x128xf32> to vector<3x16x128xf32>
    %68 = vector.shape_cast %65 : vector<3x16x128xf32> to vector<1x3x16x128xf32>
    tpu.vector_store %arg6[%c0_25, %c0_26, %c0_27, %c0_28], %68 {strides = array<i32>} : memref<1x3x16x128xf32, #tpu.memory_space<vmem>>, vector<1x3x16x128xf32>,
    return
  }
  func.func @transform_0(%arg0: i32) -> (i32, i32, i32) {
    %c0_i32 = arith.constant 0 : i32
    %c0_i32_0 = arith.constant 0 : i32
    %c0_i32_1 = arith.constant 0 : i32
    return %arg0, %c0_i32, %c0_i32_0 : i32, i32, i32
  }
  func.func @transform_1(%arg0: i32) -> (i32, i32) {
    %c0_i32 = arith.constant 0 : i32
    %c0_i32_0 = arith.constant 0 : i32
    %c0_i32_1 = arith.constant 0 : i32
    return %c0_i32, %c0_i32_0 : i32, i32
  }
  func.func @transform_2(%arg0: i32) -> (i32, i32) {
    %c0_i32 = arith.constant 0 : i32
    %c0_i32_0 = arith.constant 0 : i32
    %c0_i32_1 = arith.constant 0 : i32
    return %c0_i32, %c0_i32_0 : i32, i32
  }
  func.func @transform_3(%arg0: i32) -> (i32, i32) {
    %c0_i32 = arith.constant 0 : i32
    %c0_i32_0 = arith.constant 0 : i32
    %c0_i32_1 = arith.constant 0 : i32
    return %c0_i32, %c0_i32_0 : i32, i32
  }
  func.func @transform_4(%arg0: i32) -> (i32, i32) {
    %c0_i32 = arith.constant 0 : i32
    %c0_i32_0 = arith.constant 0 : i32
    %c0_i32_1 = arith.constant 0 : i32
    return %c0_i32, %c0_i32_0 : i32, i32
  }
  func.func @transform_5(%arg0: i32) -> (i32, i32, i32, i32) {
    %c0_i32 = arith.constant 0 : i32
    %c0_i32_0 = arith.constant 0 : i32
    %c0_i32_1 = arith.constant 0 : i32
    %c0_i32_2 = arith.constant 0 : i32
    return %arg0, %c0_i32, %c0_i32_0, %c0_i32_1 : i32, i32, i32, i32
  }
}

</mosaic_0001>

<bundles_post_ra>
// kernel: moment_probing_forward.1
= control target key start
LH: loop header
LB: loop body
LE: loop exit
PB: predicated region body
PF: predicated region fallthrough
CT: control target
= control target key end

     0   :  { %10 = vsyncpa [#allocation3], 0  ;;  %s2073_s0 = inlined_call_operand.hbm [shape: f32[2,16,128], index: 0, kind: input, shape index: {}]   ;;  %s2074_s1 = inlined_call_operand.hbm [shape: f32[64,16], index: 1, kind: input, shape index: {}]   ;;  %s2075_s2 = inlined_call_operand.hbm [shape: f32[64,1], index: 2, kind: input, shape index: {}]   ;;  %s2076_s3 = inlined_call_operand.hbm [shape: f32[16,1], index: 3, kind: input, shape index: {}]   ;;  %s2077_s4 = inlined_call_operand.hbm [shape: f32[16,1], index: 4, kind: input, shape index: {}]   ;;  %s2078_s5 = inlined_call_operand.hbm [shape: f32[2,3,16,128], index: 5, kind: output, shape index: {}]  }
   0x1   :  { %12 = vsyncpa [#allocation3 + $0x1], 0 }
   0x2   :  { %13 = vsyncpa [#allocation6], 0 }
   0x3   :  { %14 = vsyncpa [#allocation9], 0 }
   0x4   :  { %15 = vsyncpa [#allocation4], 0 }
   0x5   :  { %17 = vsyncpa [#allocation4 + $0x1], 0  ;;  %s1633_s18 = smov 0   ;;  %s1635_s19 = smov 0  }
   0x6   :  { %s1637_s20 = smov 0   ;;  %s1639_s21 = smov 0  }
   0x7 LB: > { %s1654_s22 = sadd.s32 4294967295, %s1590_s21   ;;  %s1137_s23 = sadd.s32 4294967294, %s1590_s21   ;;  %s1590_s21 = sphi %s1639_s21, %s2103_s21   ;;  %s1586_s20 = sphi %s1637_s20, %s2102_s20   ;;  %s1582_s19 = sphi %s1635_s19, %s2101_s19   ;;  %s1578_s18 = sphi %s1633_s18, %s2100_s18  }
   0x8   : > { %p43_p0 = scmp.ne.s32.totalorder %s1582_s19, %s1578_s18  ;;  %p2079_p1 = scmp.eq.s32.totalorder %s1654_s22, 0 }
   0x9   : > { %p157_p3 = scmp.eq.s32.totalorder %s1137_s23, 1  ;;  %p1138_p5 = scmp.ge.s32.totalorder %s1590_s21, 1 }
   0xa   : > { %p1663_p4 = por %p2079_p1, %p43_p0  ;;  %p164_p7 = scmp.lt.s32.totalorder %s1590_s21, 3 }
   0xb   : > { %p1668_p6 = por %p157_p3, %p43_p0  ;;  %s1592_s27 = smov [#allocation5]  }
   0xc   : > { %s2082_s24 = scalar_select %p1663_p4, 1, 0 }
   0xd   : > { %s2083_s25 = scalar_select %p1668_p6, 1, 0 }
   0xe   : > { %p1673_p8 = pnand %p1138_p5, %p164_p7  ;;  %s176_s28 = sshll.u32 %s1592_s27, 4  ;;  %s1677_s28 = int_to_ptr.vmem [resolvable:$true] %s176_s28 }
   0xf   : > { %s1593_s30 = smov [#allocation8]   ;;  %s1594_s7 = smov [#allocation7]  }
  0x10   : > { %s2084_s26 = scalar_select %p1673_p8, 1, 0 }
  0x11   : > { %p1280_p9 = pneg %p1673_p8  ;;  %s202_s6 = sshll.u32 %s1593_s30, 4  ;;  %s1688_s6 = int_to_ptr.vmem [resolvable:$true] %s202_s6 }
  0x12   : > { %s1690_s8 = sshll.u32 %s1594_s7, 4  ;;  %s1374_s11 = scalar_lea.hbm %s2074_s1, 1024  ;;  %s190_s8 = int_to_ptr.vmem [resolvable:$true] %s1690_s8 }
  0x13   : > { %p1684_p11 = pnand %p1280_p9, %p2079_p1  ;;  %p1375_p12 = scmp.ne.s32.totalorder %s2074_s1, %s1374_s11 }
  0x14   : > { %p1381_p5 = scmp.lt.u32.totalorder %s1374_s11, %s2074_s1 }
  0x15   : > { %p1700_p13 = pneg %p1684_p11 }
  0x17   : > { %p1377_p0 = pnand %p1700_p13, %p1375_p12 }
  0x19   : > { %p1378_p3 = pneg %p1377_p0 }
  0x1b   : > { %p1383_p7 = pnand %p1381_p5, %p1378_p3 }
  0x1d   : > { %1386 = shalt.err (!%p1383_p7)
}
  0x1e   : > { %s1387_s17 = scalar_lea.vmem %s1677_s28, 1024  ;;  %p1395_p2 = scmp.lt.s32.totalorder %s1677_s28, %s1677_s28 }
  0x1f   : > { %p1388_p9 = scmp.ne.s32.totalorder %s1677_s28, %s1387_s17  ;;  %p1396_p6 = scmp.lt.s32.totalorder %s1387_s17, %s1387_s17 }
  0x21   : > { %p1390_p10 = pnand %p1388_p9, %p1700_p13  ;;  %p1397_p12 = por %p1396_p6, %p1395_p2 }
  0x23   : > { %p1391_p1 = pneg %p1390_p10 }
  0x25   : > { %p1398_p0 = pnand %p1397_p12, %p1391_p1 }
  0x27   : > { %1401 = shalt.err (!%p1398_p0)
}
  0x28   : > { %s1595_s23 = smov 128   ;;  %s1596_s27 = smov 8  }
  0x29   : > { %1283 = dma.hbm_to_vmem [thread:$0]  (!%p1684_p11), %s2074_s1, 1024, %s1677_s28, [#allocation6], %s1595_s23, %s1595_s23, %s1596_s27  }
  0x2a   : > { %s1402_s11 = scalar_lea.hbm %s2076_s3, 256 }
  0x2b   : > { %p1403_p1 = scmp.ne.s32.totalorder %s2076_s3, %s1402_s11  ;;  %p1409_p10 = scmp.lt.u32.totalorder %s1402_s11, %s2076_s3 }
  0x2d   : > { %p1405_p2 = pnand %p1403_p1, %p1700_p13 }
  0x2f   : > { %p1406_p6 = pneg %p1405_p2 }
  0x31   : > { %p1411_p3 = pnand %p1409_p10, %p1406_p6 }
  0x33   : > { %1414 = shalt.err (!%p1411_p3)
}
  0x34   : > { %s1415_s28 = scalar_lea.vmem %s1688_s6, 256  ;;  %p1423_p12 = scmp.lt.s32.totalorder %s1688_s6, %s1688_s6 }
  0x35   : > { %p1416_p5 = scmp.ne.s32.totalorder %s1688_s6, %s1415_s28  ;;  %p1424_p0 = scmp.lt.s32.totalorder %s1415_s28, %s1415_s28 }
  0x37   : > { %p1418_p7 = pnand %p1416_p5, %p1700_p13  ;;  %p1425_p1 = por %p1424_p0, %p1423_p12 }
  0x39   : > { %p1419_p9 = pneg %p1418_p7 }
  0x3b   : > { %p1426_p2 = pnand %p1425_p1, %p1419_p9 }
  0x3d   : > { %1429 = shalt.err (!%p1426_p2)
}
  0x3e   : > { %1289 = dma.hbm_to_vmem [thread:$0]  (!%p1684_p11), %s2076_s3, 256, %s1688_s6, [#allocation9], %s1595_s23, %s1595_s23, %s1596_s27  }
  0x3f   : > { %s1430_s10 = scalar_lea.hbm %s2075_s2, 1024 }
  0x40   : > { %p1431_p6 = scmp.ne.s32.totalorder %s2075_s2, %s1430_s10  ;;  %p1437_p5 = scmp.lt.u32.totalorder %s1430_s10, %s2075_s2 }
  0x42   : > { %p1433_p10 = pnand %p1431_p6, %p1700_p13 }
  0x44   : > { %p1434_p3 = pneg %p1433_p10 }
  0x46   : > { %p1439_p7 = pnand %p1437_p5, %p1434_p3 }
  0x48   : > { %1442 = shalt.err (!%p1439_p7)
}
  0x49   : > { %s1443_s16 = scalar_lea.vmem %s190_s8, 1024  ;;  %p1451_p1 = scmp.lt.s32.totalorder %s190_s8, %s190_s8 }
  0x4a   : > { %p1444_p9 = scmp.ne.s32.totalorder %s190_s8, %s1443_s16  ;;  %p1452_p2 = scmp.lt.s32.totalorder %s1443_s16, %s1443_s16 }
  0x4c   : > { %p1446_p12 = pnand %p1444_p9, %p1700_p13  ;;  %p1453_p4 = por %p1452_p2, %p1451_p1 }
  0x4e   : > { %p1447_p0 = pneg %p1446_p12 }
  0x50   : > { %p1454_p8 = pnand %p1453_p4, %p1447_p0 }
  0x52   : > { %1457 = shalt.err (!%p1454_p8)
}
  0x53   : > { %1286 = dma.hbm_to_vmem [thread:$0]  (!%p1684_p11), %s2075_s2, 1024, %s190_s8, [#allocation6], %s1595_s23, %s1595_s23, %s1596_s27  }
  0x54   : > { %s1597_s17 = smov [#allocation10]   ;;  %s1458_s10 = scalar_lea.hbm %s2077_s4, 256 }
  0x55   : > { %s215_s30 = sshll.u32 %s1597_s17, 4  ;;  %p1459_p4 = scmp.ne.s32.totalorder %s2077_s4, %s1458_s10  ;;  %s216_s30 = int_to_ptr.vmem [resolvable:$true] %s215_s30 }
  0x56   : > { %p1465_p10 = scmp.lt.u32.totalorder %s1458_s10, %s2077_s4 }
  0x57   : > { %p1461_p8 = pnand %p1459_p4, %p1700_p13 }
  0x59   : > { %p1462_p6 = pneg %p1461_p8 }
  0x5b   : > { %p1467_p3 = pnand %p1465_p10, %p1462_p6 }
  0x5d   : > { %1470 = shalt.err (!%p1467_p3)
}
  0x5e   : > { %s1471_s8 = scalar_lea.vmem %s216_s30, 256  ;;  %p1479_p12 = scmp.lt.s32.totalorder %s216_s30, %s216_s30 }
  0x5f   : > { %p1472_p5 = scmp.ne.s32.totalorder %s216_s30, %s1471_s8  ;;  %p1480_p0 = scmp.lt.s32.totalorder %s1471_s8, %s1471_s8 }
  0x61   : > { %p1474_p7 = pnand %p1472_p5, %p1700_p13  ;;  %p1481_p1 = por %p1480_p0, %p1479_p12 }
  0x63   : > { %p1475_p9 = pneg %p1474_p7 }
  0x65   : > { %p1482_p2 = pnand %p1481_p1, %p1475_p9 }
  0x67   : > { %1485 = shalt.err (!%p1482_p2)
}
  0x68   : > { %1292 = dma.hbm_to_vmem [thread:$0]  (!%p1684_p11), %s2077_s4, 256, %s216_s30, [#allocation9], %s1595_s23, %s1595_s23, %s1596_s27  }
  0x69   : > { %s1794_s14 = sadd.s32 1, %s1590_s21   ;;  %s30_s29 = sadd.s32 1, %s1586_s20 }
  0x6a   : > { %s27_s28 = ssub.s32 %s1590_s21, %s1794_s14  ;;  %p37_p13 = scmp.ne.s32.totalorder %s1586_s20, %s1582_s19 }
  0x6b   : > { %p28_p4 = scmp.eq.s32.totalorder %s27_s28, 0  ;;  %p38_p8 = scmp.eq.s32.totalorder %s1590_s21, 0 }
  0x6c   : > { %p2087_p6 = scmp.eq.s32.totalorder %s1654_s22, 1  ;;  %p1305_p3 = scmp.lt.s32.totalorder %s1590_s21, 2 }
  0x6d   : > { %s1810_s7 = scalar_select %p28_p4, %s1586_s20, %s30_s29  }
  0x6e   : > { %p1804_p10 = por %p2087_p6, %p37_p13  ;;  %p39_p5 = por %p38_p8, %p37_p13 }
  0x6f   : > { %s229_s9 = sand.u32 1, %s1586_s20   ;;  %s1176_s30 = sshll.u32 %s1590_s21, 8 }
  0x70   : > { %s1144_s10 = sshll.u32 %s229_s9, 4  ;;  %s1817_s13 = scalar_lea.hbm %s2073_s0, %s1176_s30 }
  0x71   : > { %s233_s15 = scalar_lea.vmem [#allocation2], %s1144_s10  ;;  %p1821_p11 = pnand %p1305_p3, %p39_p5 }
  0x72   : > { %s240_s8 = sshll.u32 %s233_s15, 4  ;;  %s1825_s6 = scalar_lea.sflag [#allocation3], %s229_s9  ;;  %s1819_s8 = int_to_ptr.vmem [resolvable:$true] %s240_s8 }
  0x73   : > { %s1486_s29 = scalar_lea.hbm %s1817_s13, 256  ;;  %p1488_p9 = pneg %p1821_p11 }
  0x74   : > { %p1487_p7 = scmp.ne.s32.totalorder %s1817_s13, %s1486_s29  ;;  %s1491_s30 = scalar_lea.hbm %s2073_s0, 512 }
  0x75   : > { %p1492_p1 = scmp.lt.u32.totalorder %s1817_s13, %s2073_s0  ;;  %p1493_p2 = scmp.lt.u32.totalorder %s1491_s30, %s1486_s29 }
  0x76   : > { %p1489_p12 = pnand %p1488_p9, %p1487_p7  ;;  %p1495_p4 = scmp.lt.u32.totalorder %s1486_s29, %s1817_s13 }
  0x77   : > { %p1494_p13 = por %p1493_p2, %p1492_p1 }
  0x78   : > { %p1490_p0 = pneg %p1489_p12 }
  0x79   : > { %p1496_p8 = por %p1495_p4, %p1494_p13 }
  0x7b   : > { %p1497_p6 = pnand %p1496_p8, %p1490_p0 }
  0x7d   : > { %1500 = shalt.err (!%p1497_p6)
}
  0x7e   : > { %s1501_s9 = scalar_lea.vmem %s1819_s8, 256  ;;  %s1598_s15 = smov [#allocation2]  }
  0x7f   : > { %p1502_p3 = scmp.ne.s32.totalorder %s1819_s8, %s1501_s9  ;;  %s1506_s28 = sshll.u32 %s1598_s15, 4  ;;  %s1507_s28 = int_to_ptr.vmem [resolvable:$false] %s1506_s28 }
  0x80   : > { %s1508_s10 = scalar_lea.vmem %s1507_s28, 512  ;;  %p1509_p12 = scmp.lt.s32.totalorder %s1819_s8, %s1507_s28 }
  0x81   : > { %p1504_p5 = pnand %p1502_p3, %p1488_p9  ;;  %p1510_p1 = scmp.lt.s32.totalorder %s1508_s10, %s1501_s9 }
  0x83   : > { %p1505_p7 = pneg %p1504_p5  ;;  %p1511_p2 = por %p1510_p1, %p1509_p12 }
  0x85   : > { %p1512_p13 = pnand %p1511_p2, %p1505_p7 }
  0x87   : > { %1515 = shalt.err (!%p1512_p13)
}
  0x88   : > { %1296 = dma.hbm_to_vmem [thread:$0]  (!%p1821_p11), %s1817_s13, 256, %s1819_s8, %s1825_s6, %s1595_s23, %s1595_s23, %s1596_s27  }
  0x89   : > { %p2090_p9 = scmp.ne.s32.totalorder %s2084_s26, 0 }
  0x8a   : > { %s1859_s29 = sand.u32 (!%p2090_p9), 1, %s1582_s19   ;;  %p2091_p0 = scmp.ne.s32.totalorder (!%p2090_p9), %s2082_s24, 0 }
  0x8b   : > { %252 = sbr.rel (%p2090_p9) target bundleno = 898 (0x382), region = 40  ;;  %s1148_s30 = sshll.u32 (!%p2090_p9), %s1859_s29, 4 }
  0x8c   : > { %s255_s11 = scalar_lea.sflag (!%p2090_p9), [#allocation3], %s1859_s29  ;;  %s258_s12 = scalar_lea.vmem (!%p2090_p9), [#allocation2], %s1148_s30 }
  0x92   : > { %1561 = dma.done.wait (%p2091_p0), %s255_s11, 256  }
  0x93   : > { %1563 = vsyncadd (%p2091_p0), %s255_s11, 4294967040  ;;  %p2092_p4 = scmp.eq.s32.totalorder %s1654_s22, 0 }
  0x95   : > { %1565 = dma.done.wait (%p2092_p4), [#allocation6], 2048   ;;  %p2093_p11 = pmov %p2092_p4 }
  0x96   : > { %p2094_p8 = pmov %p2092_p4 }
  0x97   : > { %1567 = vsyncadd (%p2093_p11), [#allocation6], 4294965248 }
  0x98   : > { %1569 = dma.done.wait (%p2094_p8), [#allocation9], 512   ;;  %p2095_p6 = pmov %p2092_p4 }
  0x99   : > { %v1599_v0 = vmov 0   ;;  %vm359_vm0 = vcmask 130048   ;;  %v301_v1 = vld [vmem:[%s258_s12] sm:$0xff]  ;;  %v302_v2 = vld [vmem:[%s258_s12 + $0x8] sm:$0xff]  ;;  %s1258_s24 = smul.u32 48, %s1859_s29  ;;  %s1013_s16 = scalar_lea.sflag [#allocation4], %s1859_s29 }
  0x9a   : > { %1571 = vsyncadd (%p2095_p6), [#allocation9], 4294966784  ;;  %1352 = vset.pattern.permute.xlu0 %v1599_v0  ;;  %1353 = vset.pattern.permute.xlu1 %v1599_v0  ;;  %v303_v3 = vld [vmem:[#allocation5] sm:$0xff]  ;;  %v1236_v4 = vpack.c.bf16 %v302_v2, %v301_v1  ;;  %v313_v5 = vld [vmem:[#allocation7 + $0x10] sm:$0xff]  ;;  %s1259_s27 = smul.u32 768, %s1654_s22  ;;  %s1600_s9 = smov [#allocation11]  }
  0x9b   : > { %1203 = vmatprep.mubr.msk.f32.mxu0 %vm359_vm0, %v303_v3  ;;  %v315_v6 = vld [vmem:[#allocation7 + $0x20] sm:$0xff]  ;;  %v304_v7 = vld [vmem:[#allocation5 + $0x8] sm:$0xff]  ;;  %331 = vperm.xlu0 %1352, %v313_v5   ;;  %v305_v8 = vld [vmem:[#allocation5 + $0x10] sm:$0xff]  ;;  %s300_s26 = scalar_lea.vmem [#allocation11], %s1258_s24  ;;  %s1520_s15 = sshll.u32 %s1600_s9, 4  ;;  %s1521_s15 = int_to_ptr.vmem [resolvable:$false] %s1520_s15 }
  0x9c   : > { %1237 = vmatprep.subr.bf16.mxu0 %v1236_v4  ;;  %341 = vperm.xlu1 %1353, %v315_v6   ;;  %v314_v9 = vld [vmem:[#allocation7 + $0x18] sm:$0xff]  ;;  %v316_v10 = vld [vmem:[#allocation7 + $0x28] sm:$0xff]  ;;  %v307_v12 = vld [vmem:[#allocation5 + $0x20] sm:$0xff]  ;;  %s1026_s23 = sshll.u32 %s300_s26, 4  ;;  %s2027_s22 = scalar_lea.hbm %s2078_s5, %s1259_s27  ;;  %s2020_s23 = int_to_ptr.vmem [resolvable:$true] %s1026_s23 }
  0x9d   : > { %1239 = vmatpush3.bf16.msra.mxu0 %v1236_v4  ;;  %v306_v11 = vld [vmem:[#allocation5 + $0x18] sm:$0xff]  ;;  %v317_v13 = vld [vmem:[#allocation7 + $0x30] sm:$0xff]  ;;  %v308_v15 = vld [vmem:[#allocation5 + $0x28] sm:$0xff]  ;;  %s1516_s6 = scalar_lea.vmem %s2020_s23, 768  ;;  %s1522_s28 = scalar_lea.vmem %s1521_s15, 1536 }
  0x9e   : > { %v318_v14 = vld [vmem:[#allocation7 + $0x38] sm:$0xff]  ;;  %v309_v16 = vld [vmem:[#allocation5 + $0x30] sm:$0xff]  ;;  %v311_v17 = vld [vmem:[#allocation7] sm:$0xff]  ;;  %p1517_p3 = scmp.ne.s32.totalorder %s2020_s23, %s1516_s6  ;;  %p1523_p12 = scmp.lt.s32.totalorder %s2020_s23, %s1521_s15 }
  0x9f   : > { %336 = vperm.xlu0 %1352, %v314_v9   ;;  %v312_v18 = vld [vmem:[#allocation7 + $0x8] sm:$0xff]  ;;  %v310_v19 = vld [vmem:[#allocation5 + $0x38] sm:$0xff]  ;;  %v570_v20 = vld [vmem:[#allocation8] sm:$0xff]  ;;  %p1524_p1 = scmp.lt.s32.totalorder %s1522_s28, %s1516_s6 }
  0xa0   : > { %1204 = vmatmul.mubr.msk.f32.vlgmr.msra.gmra.mrb[0].mxu0 %vm359_vm0, %v304_v7  ;;  %346 = vperm.xlu1 %1353, %v316_v10   ;;  %v571_v21 = vld [vmem:[#allocation8 + $0x8] sm:$0xff]  ;;  %v572_v22 = vld [vmem:[#allocation10] sm:$0xff]  ;;  %v573_v23 = vld [vmem:[#allocation10 + $0x8] sm:$0xff]  ;;  %p1518_p5 = pnand %p1517_p3, %p1804_p10 }
  0xa1   : > { %1206 = vmatprep.mubr.msk.f32.mxu0 %vm359_vm0, %v305_v8  ;;  %p1525_p2 = por %p1524_p1, %p1523_p12 }
  0xa2   : > { %p1519_p7 = pneg %p1518_p5 }
  0xa3   : > { %351 = vperm.xlu0 %1352, %v317_v13  }
  0xa4   : > { %1207 = vmatmul.mubr.msk.f32.gmra.mrb[2].mxu0 %vm359_vm0, %v306_v11  ;;  %356 = vperm.xlu1 %1353, %v318_v14   ;;  %p1526_p13 = pnand %p1525_p2, %p1519_p7 }
  0xa5   : > { %1209 = vmatprep.mubr.msk.f32.mxu0 %vm359_vm0, %v307_v12 }
  0xa7   : > { %321 = vperm.xlu0 %1352, %v311_v17  }
  0xa8   : > { %1210 = vmatmul.mubr.msk.f32.gmra.mrb[4].mxu0 %vm359_vm0, %v308_v15  ;;  %326 = vperm.xlu1 %1353, %v312_v18  }
  0xa9   : > { %1212 = vmatprep.mubr.msk.f32.mxu0 %vm359_vm0, %v309_v16 }
  0xab   : > { %592 = vperm.xlu0 %1352, %v570_v20  }
  0xac   : > { %1213 = vmatmul.mubr.msk.f32.gmra.mrb[6].mxu0 %vm359_vm0, %v310_v19  ;;  %597 = vperm.xlu1 %1353, %v571_v21  }
  0xaf   : > { %610 = vperm.xlu0 %1352, %v572_v22  }
  0xb0   : > { %615 = vperm.xlu1 %1353, %v573_v23  }
 0x11a   : > { %v332_v25 = vpop.permute.xlu0 %331 }
 0x11b   : > { %v342_v24 = vpop.permute.xlu1 %341 }
 0x11e   : > { %v337_v27 = vpop.permute.xlu0 %336 }
 0x11f   : > { %v347_v26 = vpop.permute.xlu1 %346 }
 0x122   : > { %v352_v29 = vpop.permute.xlu0 %351 }
 0x123   : > { %v357_v28 = vpop.permute.xlu1 %356 }
 0x126   : > { %v322_v32 = vpop.permute.xlu0 %321 }
 0x127   : > { %v327_v30 = vpop.permute.xlu1 %326 }
 0x173   : > { %v1205_v31 = vpop.f32.mrb[0].mxu0 }
 0x174   : > { %v456_v33 = vadd.f32 %v1205_v31, %v327_v30  ;;  %v450_v34 = vpop.f32.mrb[1].mxu0 }
 0x175   : > { %v451_v35 = vadd.f32 %v450_v34, %v322_v32 }
 0x177   : > { %v489_v36 = vadd.f32 %v456_v33, %v451_v35  ;;  %v1208_v37 = vpop.f32.mrb[2].mxu0 }
 0x178   : > { %v466_v38 = vadd.f32 %v1208_v37, %v337_v27  ;;  %v460_v39 = vpop.f32.mrb[3].mxu0 }
 0x179   : > { %v490_v40 = vrot.slane %v489_v36, 4  ;;  %v461_v41 = vadd.f32 %v460_v39, %v332_v25 }
 0x17b   : > { %v491_v42 = vadd.f32 %v490_v40, %v489_v36  ;;  %v496_v43 = vadd.f32 %v466_v38, %v461_v41  ;;  %v1211_v44 = vpop.f32.mrb[4].mxu0 }
 0x17c   : > { %v476_v45 = vadd.f32 %v1211_v44, %v347_v26  ;;  %v470_v46 = vpop.f32.mrb[5].mxu0 }
 0x17d   : > { %v492_v47 = vrot.slane %v491_v42, 2  ;;  %v497_v48 = vrot.slane %v496_v43, 4  ;;  %v471_v49 = vadd.f32 %v470_v46, %v342_v24 }
 0x17f   : > { %v493_v50 = vadd.f32 %v492_v47, %v491_v42  ;;  %v498_v51 = vadd.f32 %v497_v48, %v496_v43  ;;  %v503_v52 = vadd.f32 %v476_v45, %v471_v49  ;;  %v1214_v53 = vpop.f32.mrb[6].mxu0 }
 0x180   : > { %v486_v54 = vadd.f32 %v1214_v53, %v357_v28  ;;  %v480_v55 = vpop.f32.mrb[7].mxu0 }
 0x181   : > { %v494_v56 = vrot.slane %v493_v50, 1  ;;  %v499_v57 = vrot.slane %v498_v51, 2  ;;  %v504_v58 = vrot.slane %v503_v52, 4  ;;  %v481_v59 = vadd.f32 %v480_v55, %v352_v29 }
 0x183   : > { %v495_v60 = vadd.f32 %v494_v56, %v493_v50  ;;  %v500_v61 = vadd.f32 %v499_v57, %v498_v51  ;;  %v505_v62 = vadd.f32 %v504_v58, %v503_v52  ;;  %v510_v63 = vadd.f32 %v486_v54, %v481_v59 }
 0x185   : > { %v518_v0 = vmul.f32 0.0625, %v495_v60  ;;  %v501_v1 = vrot.slane %v500_v61, 1  ;;  %v506_v2 = vrot.slane %v505_v62, 2  ;;  %v511_v3 = vrot.slane %v510_v63, 4 }
 0x187   : > { %v1883_v4 = vsub.f32 %v451_v35, %v518_v0  ;;  %v1885_v5 = vsub.f32 %v456_v33, %v518_v0  ;;  %v502_v6 = vadd.f32 %v501_v1, %v500_v61  ;;  %v507_v7 = vadd.f32 %v506_v2, %v505_v62 }
 0x188   : > { %v512_v8 = vadd.f32 %v511_v3, %v510_v63 }
 0x189   : > { %v530_v9 = vmul.f32 %v1883_v4, %v1883_v4  ;;  %v531_v10 = vmul.f32 %v1885_v5, %v1885_v5  ;;  %v519_v11 = vmul.f32 0.0625, %v502_v6  ;;  %v508_v12 = vrot.slane %v507_v7, 1 }
 0x18a   : > { %v513_v13 = vrot.slane %v512_v8, 2 }
 0x18b   : > { %v538_v14 = vadd.f32 %v531_v10, %v530_v9  ;;  %v1891_v15 = vsub.f32 %v461_v41, %v519_v11  ;;  %v1893_v16 = vsub.f32 %v466_v38, %v519_v11  ;;  %v509_v17 = vadd.f32 %v508_v12, %v507_v7  ;;  %v593_v9 = vpop.permute.xlu0 %592  ;;  %v598_v10 = vpop.permute.xlu1 %597 }
 0x18c   : > { %v514_v18 = vadd.f32 %v513_v13, %v512_v8  ;;  %v626_v11 = vlaneseq }
 0x18d   : > { %v539_v19 = vrot.slane %v538_v14, 4  ;;  %v532_v20 = vmul.f32 %v1891_v15, %v1891_v15  ;;  %v533_v21 = vmul.f32 %v1893_v16, %v1893_v16  ;;  %v520_v22 = vmul.f32 0.0625, %v509_v17 }
 0x18e   : > { %v515_v23 = vrot.slane %v514_v18, 1  ;;  %v1915_v17 = vand.u32 127, %v626_v11 }
 0x18f   : > { %v540_v24 = vadd.f32 %v539_v19, %v538_v14  ;;  %v545_v25 = vadd.f32 %v533_v21, %v532_v20  ;;  %v526_v26 = vsub.f32 %v471_v49, %v520_v22  ;;  %v1899_v27 = vsub.f32 %v476_v45, %v520_v22  ;;  %v611_v21 = vpop.permute.xlu0 %610  ;;  %v616_v22 = vpop.permute.xlu1 %615 }
 0x190   : > { %v516_v28 = vadd.f32 %v515_v23, %v514_v18  ;;  %vm628_vm1 = vcmp.lt.s32.totalorder %v1915_v17, 64 }
 0x191   : > { %v541_v29 = vrot.slane %v540_v24, 2  ;;  %v546_v30 = vrot.slane %v545_v25, 4  ;;  %v534_v31 = vmul.f32 %v526_v26, %v526_v26  ;;  %v535_v32 = vmul.f32 %v1899_v27, %v1899_v27  ;;  %vm1949_vm2 = vmpackc.low %vm628_vm1, %vm628_vm1 }
 0x192   : > { %v521_v33 = vmul.f32 0.0625, %v516_v28 }
 0x193   : > { %v542_v34 = vadd.f32 %v541_v29, %v540_v24  ;;  %v547_v35 = vadd.f32 %v546_v30, %v545_v25  ;;  %v552_v36 = vadd.f32 %v535_v32, %v534_v31 }
 0x194   : > { %v1903_v37 = vsub.f32 %v481_v59, %v521_v33  ;;  %v1905_v38 = vsub.f32 %v486_v54, %v521_v33 }
 0x195   : > { %v543_v39 = vrot.slane %v542_v34, 1  ;;  %v548_v40 = vrot.slane %v547_v35, 2  ;;  %v553_v41 = vrot.slane %v552_v36, 4 }
 0x196   : > { %v536_v42 = vmul.f32 %v1903_v37, %v1903_v37  ;;  %v537_v43 = vmul.f32 %v1905_v38, %v1905_v38 }
 0x197   : > { %v544_v44 = vadd.f32 %v543_v39, %v542_v34  ;;  %v549_v45 = vadd.f32 %v548_v40, %v547_v35  ;;  %v554_v46 = vadd.f32 %v553_v41, %v552_v36 }
 0x198   : > { %v559_v47 = vadd.f32 %v537_v43, %v536_v42 }
 0x199   : > { %v566_v48 = vmul.f32 0.0625, %v544_v44  ;;  %v550_v49 = vrot.slane %v549_v45, 1  ;;  %v555_v50 = vrot.slane %v554_v46, 2 }
 0x19a   : > { %v560_v51 = vrot.slane %v559_v47, 4 }
 0x19b   : > { %v574_v52 = vadd.f32 1e-05, %v566_v48  ;;  %v551_v53 = vadd.f32 %v550_v49, %v549_v45  ;;  %v556_v54 = vadd.f32 %v555_v50, %v554_v46 }
 0x19c   : > { %v561_v55 = vadd.f32 %v560_v51, %v559_v47 }
 0x19d   : > { %1354 = vrsqrt.f32 %v574_v52  ;;  %v567_v56 = vmul.f32 0.0625, %v551_v53  ;;  %v557_v57 = vrot.slane %v556_v54, 1 }
 0x19e   : > { %v562_v58 = vrot.slane %v561_v55, 2 }
 0x19f   : > { %v575_v59 = vadd.f32 1e-05, %v567_v56  ;;  %v558_v60 = vadd.f32 %v557_v57, %v556_v54 }
 0x1a0   : > { %v563_v61 = vadd.f32 %v562_v58, %v561_v55 }
 0x1a1   : > { %1356 = vrsqrt.f32 %v575_v59  ;;  %v568_v62 = vmul.f32 0.0625, %v558_v60 }
 0x1a2   : > { %v564_v63 = vrot.slane %v563_v61, 1 }
 0x1a3   : > { %v576_v0 = vadd.f32 1e-05, %v568_v62 }
 0x1a4   : > { %v565_v1 = vadd.f32 %v564_v63, %v563_v61 }
 0x1a5   : > { %1358 = vrsqrt.f32 %v576_v0 }
 0x1a6   : > { %v569_v2 = vmul.f32 0.0625, %v565_v1 }
 0x1a7   : > { %v1355_v3 = vpop.eup %1354 }
 0x1a8   : > { %v582_v6 = vmul.f32 %v1355_v3, %v1883_v4  ;;  %v577_v7 = vadd.f32 1e-05, %v569_v2  ;;  %v583_v8 = vmul.f32 %v1355_v3, %v1885_v5 }
 0x1aa   : > { %1360 = vrsqrt.f32 %v577_v7  ;;  %v600_v35 = vmul.f32 %v593_v9, %v582_v6  ;;  %v601_v41 = vmul.f32 %v598_v10, %v583_v8 }
 0x1ab   : > { %v1357_v12 = vpop.eup %1356 }
 0x1ac   : > { %v584_v13 = vmul.f32 %v1357_v12, %v1891_v15  ;;  %v585_v14 = vmul.f32 %v1357_v12, %v1893_v16  ;;  %v619_v43 = vadd.f32 %v616_v22, %v601_v41 }
 0x1ae   : > { %v603_v18 = vmul.f32 %v598_v10, %v585_v14  ;;  %v602_v19 = vmul.f32 %v593_v9, %v584_v13  ;;  %v632_v45 = vsel %vm628_vm1, %v619_v43, 0.0 }
 0x1af   : > { %v1359_v20 = vpop.eup %1358 }
 0x1b0   : > { %v586_v4 = vmul.f32 %v1359_v20, %v526_v26  ;;  %v621_v23 = vadd.f32 %v616_v22, %v603_v18  ;;  %v620_v24 = vadd.f32 %v611_v21, %v602_v19  ;;  %v587_v5 = vmul.f32 %v1359_v20, %v1899_v27 }
 0x1b2   : > { %v634_v25 = vsel %vm628_vm1, %v621_v23, 0.0  ;;  %v633_v15 = vsel %vm628_vm1, %v620_v24, 0.0  ;;  %v604_v16 = vmul.f32 %v593_v9, %v586_v4  ;;  %v605_v28 = vmul.f32 %v598_v10, %v587_v5 }
 0x1b3   : > { %645 = vadd.xlane.f32.xlu1 %v634_v25  ;;  %643 = vadd.xlane.f32.xlu0 %v633_v15 }
 0x1b4   : > { %v1361_v29 = vpop.eup %1360  ;;  %v622_v30 = vadd.f32 %v611_v21, %v604_v16  ;;  %v623_v32 = vadd.f32 %v616_v22, %v605_v28 }
 0x1b5   : > { %v588_v26 = vmul.f32 %v1361_v29, %v1903_v37  ;;  %v589_v31 = vmul.f32 %v1361_v29, %v1905_v38  ;;  %v618_v38 = vadd.f32 %v611_v21, %v600_v35 }
 0x1b6   : > { %v1927_v27 = vsel %vm628_vm1, %v622_v30, 0.0  ;;  %v636_v39 = vsel %vm628_vm1, %v623_v32, 0.0 }
 0x1b7   : > { %647 = vadd.xlane.f32.xlu0 %v1927_v27  ;;  %v606_v33 = vmul.f32 %v593_v9, %v588_v26  ;;  %v607_v34 = vmul.f32 %v598_v10, %v589_v31  ;;  %v1941_v44 = vsel %vm628_vm1, %v618_v38, 0.0 }
 0x1b9   : > { %v624_v36 = vadd.f32 %v611_v21, %v606_v33  ;;  %v625_v40 = vadd.f32 %v616_v22, %v607_v34 }
 0x1bb   : > { %v1934_v37 = vsel %vm628_vm1, %v624_v36, 0.0  ;;  %649 = vadd.xlane.f32.xlu0 %v636_v39  ;;  %v638_v42 = vsel %vm628_vm1, %v625_v40, 0.0 }
 0x1bc   : > { %651 = vadd.xlane.f32.xlu1 %v1934_v37 }
 0x1bf   : > { %653 = vadd.xlane.f32.xlu0 %v638_v42 }
 0x1c0   : > { %639 = vadd.xlane.f32.xlu1 %v1941_v44 }
 0x1c3   : > { %641 = vadd.xlane.f32.xlu0 %v632_v45 }
 0x240   : > { %v646_v46 = vpop.xlane.xlu1 %645  ;;  %v644_v47 = vpop.xlane.xlu0 %643 }
 0x241   : > { %v662_v48 = vadd.f32 %v646_v46, %v644_v47 }
 0x243   : > { %v663_v49 = vrot.slane %v662_v48, 4 }
 0x244   : > { %v648_v50 = vpop.xlane.xlu0 %647 }
 0x245   : > { %v664_v51 = vadd.f32 %v663_v49, %v662_v48 }
 0x247   : > { %v665_v52 = vrot.slane %v664_v51, 2 }
 0x248   : > { %v650_v53 = vpop.xlane.xlu0 %649 }
 0x249   : > { %v666_v54 = vadd.f32 %v665_v52, %v664_v51  ;;  %v669_v55 = vadd.f32 %v650_v53, %v648_v50  ;;  %v652_v56 = vpop.xlane.xlu1 %651 }
 0x24b   : > { %v667_v57 = vrot.slane %v666_v54, 1  ;;  %v670_v58 = vrot.slane %v669_v55, 4 }
 0x24c   : > { %v654_v59 = vpop.xlane.xlu0 %653 }
 0x24d   : > { %v671_v60 = vadd.f32 %v670_v58, %v669_v55  ;;  %v676_v61 = vadd.f32 %v654_v59, %v652_v56  ;;  %v668_v62 = vadd.f32 %v667_v57, %v666_v54  ;;  %v640_v2 = vpop.xlane.xlu1 %639 }
 0x24f   : > { %v672_v63 = vrot.slane %v671_v60, 2  ;;  %v677_v0 = vrot.slane %v676_v61, 4  ;;  %v684_v1 = vmul.f32 0.0009765625, %v668_v62 }
 0x250   : > { %v642_v3 = vpop.xlane.xlu0 %641 }
 0x251   : > { %v673_v6 = vadd.f32 %v672_v63, %v671_v60  ;;  %v678_v7 = vadd.f32 %v677_v0, %v676_v61  ;;  %v655_v8 = vadd.f32 %v642_v3, %v640_v2  ;;  %v689_v9 = vsub.f32 %v633_v15, %v684_v1 }
 0x252   : > { %v690_v10 = vsub.f32 %v634_v25, %v684_v1 }
 0x253   : > { %v674_v11 = vrot.slane %v673_v6, 1  ;;  %v679_v12 = vrot.slane %v678_v7, 2  ;;  %v656_v13 = vrot.slane %v655_v8, 4 }
 0x254   : > { %v1240_v18 = vpack.c.bf16 %v690_v10, %v689_v9 }
 0x255   : > { %v675_v19 = vadd.f32 %v674_v11, %v673_v6  ;;  %v680_v20 = vadd.f32 %v679_v12, %v678_v7  ;;  %v657_v21 = vadd.f32 %v656_v13, %v655_v8 }
 0x256   : > { %1242 = vmatprep.subr.msk.bf16.mxu1 %vm1949_vm2, %v1240_v18 }
 0x257   : > { %v685_v22 = vmul.f32 0.0009765625, %v675_v19  ;;  %v681_v4 = vrot.slane %v680_v20, 1  ;;  %v658_v23 = vrot.slane %v657_v21, 2  ;;  %1245 = vmatpush3.bf16.xpose.msk.msra.mxu1 %vm1949_vm2, %v1240_v18 }
 0x259   : > { %v692_v24 = vsub.f32 %v636_v39, %v685_v22  ;;  %v682_v5 = vadd.f32 %v681_v4, %v680_v20  ;;  %v659_v25 = vadd.f32 %v658_v23, %v657_v21  ;;  %v691_v15 = vsub.f32 %v1927_v27, %v685_v22 }
 0x25b   : > { %v686_v16 = vmul.f32 0.0009765625, %v682_v5  ;;  %1233 = vmatprep.mubr.msk.f32.mxu0 %vm628_vm1, %v691_v15  ;;  %v1246_v28 = vpack.c.bf16 %v692_v24, %v691_v15  ;;  %v660_v29 = vrot.slane %v659_v25, 1 }
 0x25d   : > { %v693_v30 = vsub.f32 %v1934_v37, %v686_v16  ;;  %v694_v26 = vsub.f32 %v638_v42, %v686_v16  ;;  %1248 = vmatprep.subr.msk.bf16.mxu1 %vm1949_vm2, %v1246_v28  ;;  %v661_v31 = vadd.f32 %v660_v29, %v659_v25 }
 0x25f   : > { %v1252_v32 = vpack.c.bf16 %v694_v26, %v693_v30  ;;  %v683_v33 = vmul.f32 0.0009765625, %v661_v31 }
 0x261   : > { %1254 = vmatprep.subr.msk.bf16.mxu0 %vm1949_vm2, %v1252_v32  ;;  %v687_v27 = vsub.f32 %v1941_v44, %v683_v33  ;;  %v688_v34 = vsub.f32 %v632_v45, %v683_v33 }
 0x262   : > { %1257 = vmatpush3.bf16.xpose.msk.msra.mxu0 %vm1949_vm2, %v1252_v32 }
 0x263   : > { %1219 = vmatprep.mubr.msk.f32.mxu1 %vm628_vm1, %v687_v27 }
 0x264   : > { %1220 = vmatmul.mubr.msk.f32.vlgmr.msra.gmra.mrb[0].mxu1 %vm628_vm1, %v688_v34 }
 0x265   : > { %1251 = vmatpush3.bf16.xpose.msk.msra.mxu1 %vm1949_vm2, %v1246_v28  ;;  %1226 = vmatprep.mubr.msk.f32.mxu1 %vm628_vm1, %v689_v9 }
 0x269   : > { %1234 = vmatmul.mubr.msk.f32.vlgmr.msra.gmra.mrb[8].mxu0 %vm628_vm1, %v692_v24 }
 0x26c   : > { %1227 = vmatmul.mubr.msk.f32.vlgmr.msra.gmra.mrb[2].mxu1 %vm628_vm1, %v690_v10 }
 0x337   : > { %v1221_v35 = vpop.f32.mrb[0].mxu1 }
 0x338   : > { %v1980_v36 = vmul.f32 0.015625, %v1221_v35  ;;  %v769_v39 = vpop.f32.mrb[1].mxu1 }
 0x339   : > { %v1982_v40 = vmul.f32 0.015625, %v769_v39 }
 0x33a   : > { %v935_v41 = vmul.f32 %v1980_v36, %v1980_v36 }
 0x33b   : > { %v934_v37 = vmul.f32 %v1982_v40, %v1982_v40 }
 0x33c   : > { %v941_v38 = vsel %vm359_vm0, %v935_v41, 0.0  ;;  %v1235_v42 = vpop.f32.mrb[8].mxu0 }
 0x33d   : > { %v940_v43 = vsel %vm359_vm0, %v934_v37, 0.0  ;;  %v1990_v44 = vmul.f32 0.015625, %v1235_v42  ;;  %v919_v17 = vpop.f32.mrb[9].mxu0 }
 0x33e   : > { %v942_v45 = vadd.f32 %v941_v38, %v940_v43  ;;  %v1992_v46 = vmul.f32 0.015625, %v919_v17 }
 0x33f   : > { %v939_v47 = vmul.f32 %v1990_v44, %v1990_v44  ;;  %v1228_v48 = vpop.f32.mrb[2].mxu1 }
 0x340   : > { %v943_v49 = vrot.slane %v942_v45, 4  ;;  %v938_v50 = vmul.f32 %v1992_v46, %v1992_v46  ;;  %v1998_v51 = vmul.f32 0.015625, %v1228_v48  ;;  %v844_v52 = vpop.f32.mrb[3].mxu1 }
 0x341   : > { %v959_v53 = vsel %vm359_vm0, %v939_v47, 0.0  ;;  %v2001_v54 = vmul.f32 0.015625, %v844_v52 }
 0x342   : > { %v944_v55 = vadd.f32 %v943_v49, %v942_v45  ;;  %v958_v56 = vsel %vm359_vm0, %v938_v50, 0.0  ;;  %v937_v57 = vmul.f32 %v1998_v51, %v1998_v51 }
 0x343   : > { %v960_v58 = vadd.f32 %v959_v53, %v958_v56  ;;  %v936_v59 = vmul.f32 %v2001_v54, %v2001_v54 }
 0x344   : > { %v945_v60 = vrot.slane %v944_v55, 2  ;;  %v950_v61 = vsel %vm359_vm0, %v937_v57, 0.0 }
 0x345   : > { %v961_v62 = vrot.slane %v960_v58, 4  ;;  %v949_v63 = vsel %vm359_vm0, %v936_v59, 0.0 }
 0x346   : > { %v946_v0 = vadd.f32 %v945_v60, %v944_v55  ;;  %v951_v1 = vadd.f32 %v950_v61, %v949_v63 }
 0x347   : > { %v962_v2 = vadd.f32 %v961_v62, %v960_v58 }
 0x348   : > { %v947_v3 = vrot.slane %v946_v0, 1  ;;  %v952_v6 = vrot.slane %v951_v1, 4 }
 0x349   : > { %v963_v7 = vrot.slane %v962_v2, 2 }
 0x34a   : > { %v948_v8 = vadd.f32 %v947_v3, %v946_v0  ;;  %v953_v9 = vadd.f32 %v952_v6, %v951_v1 }
 0x34b   : > { %v964_v10 = vadd.f32 %v963_v7, %v962_v2 }
 0x34c   : > { %1362 = vrsqrt.f32 %v948_v8  ;;  %v954_v12 = vrot.slane %v953_v9, 2  ;;  %vm969_vm3 = vcmp.eq.f32.partialorder %v948_v8, inf  ;;  %v972_v22 = vand.u32 2147483648, %v948_v8 }
 0x34d   : > { %v965_v11 = vrot.slane %v964_v10, 1  ;;  %vm971_vm4 = vcmp.eq.f32.partialorder %v948_v8, 0.0 }
 0x34e   : > { %v955_v14 = vadd.f32 %v954_v12, %v953_v9 }
 0x34f   : > { %v966_v13 = vadd.f32 %v965_v11, %v964_v10 }
 0x350   : > { %v956_v18 = vrot.slane %v955_v14, 1 }
 0x351   : > { %1364 = vrsqrt.f32 %v966_v13  ;;  %vm983_vm5 = vcmp.eq.f32.partialorder %v966_v13, inf  ;;  %v986_v15 = vand.u32 2147483648, %v966_v13  ;;  %vm985_vm6 = vcmp.eq.f32.partialorder %v966_v13, 0.0 }
 0x352   : > { %v957_v19 = vadd.f32 %v956_v18, %v955_v14 }
 0x354   : > { %1366 = vrsqrt.f32 %v957_v19  ;;  %vm976_vm7 = vcmp.eq.f32.partialorder %v957_v19, inf  ;;  %v979_v31 = vand.u32 2147483648, %v957_v19  ;;  %vm978_vm8 = vcmp.eq.f32.partialorder %v957_v19, 0.0 }
 0x356   : > { %v1363_v20 = vpop.eup %1362 }
 0x357   : > { %v968_v21 = vmul.f32 %v1363_v20, %v948_v8 }
 0x359   : > { %v970_v4 = vsel %vm969_vm3, %v948_v8, %v968_v21 }
 0x35a   : > { %v973_v23 = vsel %vm971_vm4, %v972_v22, %v970_v4 }
 0x35b   : > { %v1365_v24 = vpop.eup %1364  ;;  %v988_v5 = vmax.f32 %v973_v23, 1e-12 }
 0x35c   : > { %v982_v25 = vmul.f32 %v1365_v24, %v966_v13 }
 0x35d   : > { %1368 = vrcp.f32 %v988_v5 }
 0x35e   : > { %v984_v16 = vsel %vm983_vm5, %v966_v13, %v982_v25  ;;  %v1367_v29 = vpop.eup %1366 }
 0x35f   : > { %v987_v28 = vsel %vm985_vm6, %v986_v15, %v984_v16  ;;  %v975_v26 = vmul.f32 %v1367_v29, %v957_v19 }
 0x360   : > { %v990_v30 = vmax.f32 %v987_v28, 1e-12 }
 0x361   : > { %v977_v32 = vsel %vm976_vm7, %v957_v19, %v975_v26 }
 0x362   : > { %1370 = vrcp.f32 %v990_v30  ;;  %v980_v33 = vsel %vm978_vm8, %v979_v31, %v977_v32 }
 0x363   : > { %v989_v27 = vmax.f32 %v980_v33, 1e-12 }
 0x365   : > { %1372 = vrcp.f32 %v989_v27 }
 0x367   : > { %v1369_v34 = vpop.eup %1368 }
 0x368   : > { %v992_v35 = vmul.f32 %v1369_v34, %v1982_v40  ;;  %v993_v39 = vmul.f32 %v1369_v34, %v1980_v36 }
 0x36a   : > { %v1000_v41 = vsel %vm359_vm0, %v992_v35, 0.0  ;;  %v1001_v37 = vsel %vm359_vm0, %v993_v39, 0.0 }
 0x36b   : > { %1006 = vst [vmem:[%s300_s26] sm:$0xff] %v1000_v41  ;;  %1007 = vst [vmem:[%s300_s26 + $0x8] sm:$0xff] %v1001_v37 }
 0x36c   : > { %v1371_v38 = vpop.eup %1370 }
 0x36d   : > { %v998_v42 = vmul.f32 %v1371_v38, %v1992_v46  ;;  %v999_v43 = vmul.f32 %v1371_v38, %v1990_v44 }
 0x36f   : > { %v1004_v17 = vsel %vm359_vm0, %v998_v42, 0.0  ;;  %v1005_v36 = vsel %vm359_vm0, %v999_v43, 0.0  ;;  %v1373_v40 = vpop.eup %1372 }
 0x370   : > { %1010 = vst [vmem:[%s300_s26 + $0x20] sm:$0xff] %v1004_v17  ;;  %1011 = vst [vmem:[%s300_s26 + $0x28] sm:$0xff] %v1005_v36  ;;  %v995_v45 = vmul.f32 %v1373_v40, %v2001_v54  ;;  %v996_v44 = vmul.f32 %v1373_v40, %v1998_v51 }
 0x372   : > { %v1002_v46 = vsel %vm359_vm0, %v995_v45, 0.0  ;;  %v1003_v47 = vsel %vm359_vm0, %v996_v44, 0.0 }
 0x373   : > { %1008 = vst [vmem:[%s300_s26 + $0x10] sm:$0xff] %v1002_v46  ;;  %1009 = vst [vmem:[%s300_s26 + $0x18] sm:$0xff] %v1003_v47 }
 0x374   : > { %1529 = shalt.err (!%p1526_p13)
}
 0x375   : > { %s1530_s10 = scalar_lea.hbm %s2027_s22, 768  ;;  %s1534_s12 = scalar_lea.hbm %s2078_s5, 1536 }
 0x376   : > { %p1531_p9 = scmp.ne.s32.totalorder %s2027_s22, %s1530_s10  ;;  %p1535_p11 = scmp.lt.u32.totalorder %s2027_s22, %s2078_s5 }
 0x377   : > { %p1536_p8 = scmp.lt.u32.totalorder %s1534_s12, %s1530_s10  ;;  %p1538_p3 = scmp.lt.u32.totalorder %s1530_s10, %s2027_s22 }
 0x378   : > { %p1532_p0 = pnand %p1531_p9, %p1804_p10 }
 0x379   : > { %p1537_p6 = por %p1536_p8, %p1535_p11 }
 0x37a   : > { %p1533_p4 = pneg %p1532_p0 }
 0x37b   : > { %p1539_p5 = por %p1538_p3, %p1537_p6 }
 0x37d   : > { %p1540_p7 = pnand %p1539_p5, %p1533_p4 }
 0x37f   : > { %1543 = shalt.err (!%p1540_p7)
}
 0x380   : > { %s1601_s27 = smov 128   ;;  %s1602_s13 = smov 8  }
 0x381   : > { %1278 = dma.vmem_to_hbm [thread:$0]  (%p1804_p10), %s2020_s23, 768, %s2027_s22, %s1013_s16, %s1601_s27, %s1601_s27, %s1602_s13  }
 0x382 PF: > { %s1041_s8 = sand.u32 1, %s1578_s18   ;;  %p2098_p12 = scmp.ne.s32.totalorder %s2083_s25, 0 }
 0x383   : > { %p2099_p1 = scmp.ge.s32.totalorder %s1590_s21, 2  ;;  %s1042_s6 = scalar_lea.sflag [#allocation4], %s1041_s8 }
 0x385   : > { %p1298_p2 = pnand %p2099_p1, %p2098_p12 }
 0x387   : > { %1573 = dma.done.wait (!%p1298_p2), %s1042_s6, 768  }
 0x388   : > { %1575 = vsyncadd (!%p1298_p2), %s1042_s6, 4294966528  ;;  %p20_p13 = scmp.ge.s32.totalorder %s1794_s14, 4   ;;  %s2100_s18 = smov %s1582_s19 }
 0x389   : > { %s2101_s19 = smov %s1586_s20  ;;  %s2102_s20 = smov %s1810_s7 }
 0x38a   : > { %s2103_s21 = smov %s1794_s14  ;;  %22 = sbr.rel (!%p20_p13) target bundleno = 7 (0x7), region = 101 }
 0x391   :  { %1047 = vsyncpa [#allocation3], 1 }
 0x392   :  { %1049 = vsyncpa [#allocation3 + $0x1], 1 }
 0x393   :  { %1050 = vsyncpa [#allocation6], 1 }
 0x394   :  { %1051 = vsyncpa [#allocation9], 1 }
 0x395   :  { %1052 = vsyncpa [#allocation4], 1 }
 0x396   :  { %1054 = vsyncpa [#allocation4 + $0x1], 1 }

</bundles_post_ra>
